<compile_context>
chip_gen: v5e
topology: v5e:2x2
jax: 0.10.0
libtpu: 0.0.40
codegen_flags: <defaults>
</compile_context>

<pallas_src>
import math
import functools

import jax
import jax.numpy as jnp
from jax.experimental import pallas as pl
from jax.experimental.pallas import tpu as pltpu


def _build_pe_table(max_len: int, dim: int) -> jnp.ndarray:
    """Sinusoidal positional-encoding table, shape (max_len, dim), float32."""
    position = jnp.arange(max_len, dtype=jnp.float32)[:, None]          # (L, 1)
    div_term = jnp.exp(
        jnp.arange(0, dim, 2, dtype=jnp.float32) * -(math.log(10000.0) / dim)
    )                                                                    # (D/2,)
    angles = position * div_term                                         # (L, D/2)
    pe = jnp.zeros((max_len, dim), dtype=jnp.float32)
    pe = pe.at[:, 0::2].set(jnp.sin(angles))
    pe = pe.at[:, 1::2].set(jnp.cos(angles))
    return pe


def _pos_enc_kernel(emb_ref, pe_ref, out_ref, *, scale):
    # emb_ref/out_ref: (TB, TL) lane-dense tiles; pe_ref: (1, TL) broadcast
    # over sublanes.  Compute in f32 (v5e has no bf16 VPU), cast on store.
    emb = emb_ref[...].astype(jnp.float32)
    pe = pe_ref[...].astype(jnp.float32)
    out_ref[...] = (emb * scale + pe).astype(out_ref.dtype)


def _num_tensorcores() -> int:
    """Best-effort TensorCore-per-chip count (v7x=2, v5e/v6e=1)."""
    try:
        info = pltpu.get_tpu_info()
        for attr in ("num_cores", "num_tensorcores", "tensorcore_count",
                     "cores_per_chip", "core_count"):
            v = getattr(info, attr, None)
            if isinstance(v, int) and v > 0:
                return v
    except Exception:
        pass
    try:
        kind = jax.devices()[0].device_kind.lower()
        if "v7" in kind:
            return 2
    except Exception:
        pass
    return 1


def _choose_tiles(B: int, L: int, itemsize: int, num_cores: int):
    """Pick (row_tile, col_tile) for the flattened (B, L) layout (L % 128 == 0)."""
    # Sublane packing factor: f32 -> 8, bf16 -> 16, int8/fp8 -> 32 rows native.
    pack = max(1, 4 // itemsize)
    sub = 8 * pack

    per_buf = 4 << 20  # ~4 MiB per emb/out buffer (double-buffered x2 arrays = 16 MiB)

    # Lane (last) axis tile: multiple of 128; also cap the pe block's *padded*
    # footprint (Mosaic pads (1, tl) to 8 sublanes -> 8*tl*itemsize per buffer).
    max_tl_from_emb = max(128, (per_buf // (sub * itemsize)) // 128 * 128)
    max_tl_from_pe = max(128, ((2 << 20) // (8 * itemsize)) // 128 * 128)
    tl = min(L, max_tl_from_emb, max_tl_from_pe)

    # Sublane (row) axis tile: multiple of the packed-sublane group, or full B.
    rows_fit = max(1, per_buf // (tl * itemsize))
    if rows_fit >= B:
        tb = B
    else:
        tb = min(B, max(sub, (rows_fit // sub) * sub))

    # v7x (2 TCs): guarantee a balanced >=2-step split along a parallel axis
    # when there is real work; skip entirely on single-TC v5e/v6e.
    steps = pl.cdiv(B, tb) * pl.cdiv(L, tl)
    if num_cores >= 2 and steps == 1 and B * L * itemsize >= (1 << 20):
        if B >= 2 * sub:
            half = pl.cdiv(pl.cdiv(B, 2), sub) * sub
            tb = max(sub, min(half, B - sub))
        elif L >= 256:
            half = pl.cdiv(pl.cdiv(L, 2), 128) * 128
            tl = max(128, min(half, L - 128))

    return tb, tl


def positional_encoding_forward(emb: jnp.ndarray, pe_table: jnp.ndarray) -> jnp.ndarray:
    """emb: (B, S, D); pe_table: (max_len, D) float32. Eval-mode forward."""
    B, S, D = emb.shape
    assert S <= pe_table.shape[0], "sequence length exceeds max_len of pe table"
    scale = math.sqrt(D)

    L = S * D
    # Pad lane axis to a multiple of 128 so tiles stay lane-dense / unmasked.
    Lp = pl.cdiv(L, 128) * 128

    emb2d = emb.reshape(B, L)                                        # lane-dense rows
    pe2d = pe_table[:S, :].reshape(1, L).astype(emb.dtype)           # pe in act dtype
    if Lp != L:
        emb2d = jnp.pad(emb2d, ((0, 0), (0, Lp - L)))
        pe2d = jnp.pad(pe2d, ((0, 0), (0, Lp - L)))

    itemsize = jnp.dtype(emb.dtype).itemsize
    num_cores = _num_tensorcores()
    tb, tl = _choose_tiles(B, Lp, itemsize, num_cores)

    # Grid = (columns, rows): the row axis is the fastest-varying (last) grid
    # axis, so pe's block index is held constant across consecutive steps and
    # Pallas does not re-fetch the (1, tl) pe block for every row tile.
    grid = (pl.cdiv(Lp, tl), pl.cdiv(B, tb))

    kernel = functools.partial(_pos_enc_kernel, scale=scale)

    cost = pl.CostEstimate(
        flops=2 * B * L,
        transcendentals=0,
        bytes_accessed=2 * B * Lp * itemsize + Lp * itemsize,
    )

    out2d = pl.pallas_call(
        kernel,
        out_shape=jax.ShapeDtypeStruct((B, Lp), emb.dtype),
        grid=grid,
        in_specs=[
            pl.BlockSpec((tb, tl), lambda j, i: (i, j)),   # emb
            pl.BlockSpec((1, tl), lambda j, i: (0, j)),    # pe (col-only -> reused)
        ],
        out_specs=pl.BlockSpec((tb, tl), lambda j, i: (i, j)),
        compiler_params=pltpu.CompilerParams(
            dimension_semantics=("parallel", "parallel"),
            vmem_limit_bytes=32 * 1024 * 1024,
        ),
        cost_estimate=cost,
    )(emb2d, pe2d)

    if Lp != L:
        out2d = out2d[:, :L]
    return out2d.reshape(B, S, D)


if __name__ == "__main__":
    # Module config (deterministic, synthetic): dropout=0.1, dim=32, max_len=5000
    dropout_p = 0.1  # eval-mode dropout is identity
    # TODO(synk): training-mode dropout (scaled Bernoulli mask via pltpu PRNG) not applied here.
    # TODO(synk): the `step is not None` decode path (emb*sqrt(D) + pe[:, step]) is not wired up.
    dim = 32
    max_len = 5000

    batch, seq = 2, 8
    key = jax.random.PRNGKey(0)
    emb = jax.random.normal(key, (batch, seq, dim), dtype=jnp.float32)

    pe_table = _build_pe_table(max_len, dim)

    out = positional_encoding_forward(emb, pe_table)
    out = jax.block_until_ready(out)

    # Reference check in plain JAX
    ref = emb * math.sqrt(dim) + pe_table[None, :seq, :]
    assert out.shape == (batch, seq, dim)
    assert jnp.allclose(out, ref, atol=1e-5, rtol=1e-5)

    print("KERNEL_OK")
</pallas_src>

<mosaic_0001>
module attributes {stable_mosaic.version = 11 : i64} {
  func.func @_pos_enc_kernel(%arg0: i32, %arg1: i32, %arg2: memref<2x256xf32, #tpu.memory_space<vmem>>, %arg3: memref<1x256xf32, #tpu.memory_space<vmem>>, %arg4: memref<2x256xf32, #tpu.memory_space<vmem>>) attributes {dimension_semantics = [#tpu.dimension_semantics<parallel>, #tpu.dimension_semantics<parallel>], iteration_bounds = array<i64: 1, 1>, scalar_prefetch = 0 : i64, scratch_operands = 0 : i64, tpu.core_type = #tpu.core_type<tc>, window_params = [{transform_indices = @transform_0, window_bounds = array<i64: 2, 256>}, {transform_indices = @transform_1, window_bounds = array<i64: 1, 256>}, {transform_indices = @transform_2, window_bounds = array<i64: 2, 256>}]} {
    %c0 = arith.constant 0 : index
    %c0_0 = arith.constant 0 : index
    %0 = vector.load %arg2[%c0, %c0_0] : memref<2x256xf32, #tpu.memory_space<vmem>>, vector<2x256xf32>
    %c0_1 = arith.constant 0 : index
    %c0_2 = arith.constant 0 : index
    %1 = vector.load %arg3[%c0_1, %c0_2] : memref<1x256xf32, #tpu.memory_space<vmem>>, vector<1x256xf32>
    %cst = arith.constant 5.65685415 : f32
    %2 = vector.broadcast %cst : f32 to vector<2x256xf32>
    %3 = arith.mulf %0, %2 : vector<2x256xf32>
    %4 = vector.broadcast %1 : vector<1x256xf32> to vector<2x256xf32>
    %5 = arith.addf %3, %4 : vector<2x256xf32>
    %c0_3 = arith.constant 0 : index
    %c0_4 = arith.constant 0 : index
    %6 = vector.load %arg4[%c0_3, %c0_4] : memref<2x256xf32, #tpu.memory_space<vmem>>, vector<2x256xf32>
    tpu.vector_store %arg4[%c0_3, %c0_4], %5 {strides = array<i32>} : memref<2x256xf32, #tpu.memory_space<vmem>>, vector<2x256xf32>,
    return
  }
  func.func @transform_0(%arg0: i32, %arg1: i32) -> (i32, i32) {
    %c0_i32 = arith.constant 0 : i32
    return %arg1, %arg0 : i32, i32
  }
  func.func @transform_1(%arg0: i32, %arg1: i32) -> (i32, i32) {
    %c0_i32 = arith.constant 0 : i32
    %c0_i32_0 = arith.constant 0 : i32
    return %c0_i32, %arg0 : i32, i32
  }
  func.func @transform_2(%arg0: i32, %arg1: i32) -> (i32, i32) {
    %c0_i32 = arith.constant 0 : i32
    return %arg1, %arg0 : i32, i32
  }
}

</mosaic_0001>

<bundles_post_ra>
// kernel: tpu_custom_call.1
= control target key start
LH: loop header
LB: loop body
LE: loop exit
PB: predicated region body
PF: predicated region fallthrough
CT: control target
= control target key end

     0   :  { %7 = vsyncpa [#allocation3], 0  ;;  %s178_s0 = inlined_call_operand.hbm [shape: f32[2,256], index: 0, kind: input, shape index: {}]   ;;  %s179_s1 = inlined_call_operand.hbm [shape: f32[1,256], index: 1, kind: input, shape index: {}]   ;;  %s180_s2 = inlined_call_operand.hbm [shape: f32[2,256], index: 2, kind: output, shape index: {}]  }
   0x1   :  { %8 = vsyncpa [#allocation6], 0 }
   0x2   :  { %9 = vsyncpa [#allocation4], 0  ;;  %s15_s11 = sshll.u32 %s178_s0, 4  ;;  %s151_s12 = smov [#allocation2]   ;;  %s16_s11 = int_to_ptr.hbm [resolvable:$true] %s15_s11 }
   0x3   :  { %s17_s13 = sshll.u32 %s151_s12, 4  ;;  %s26_s16 = sshll.u32 %s179_s1, 4  ;;  %s18_s13 = int_to_ptr.vmem [resolvable:$true] %s17_s13  ;;  %s27_s16 = int_to_ptr.hbm [resolvable:$true] %s26_s16 }
   0x4   :  { %20 = dma.hbm_to_vmem [thread:$0]  %s16_s11, 64, %s18_s13, [#allocation3]  }
   0x5   :  { %s152_s17 = smov [#allocation5]  }
   0x6   :  { %s28_s18 = sshll.u32 %s152_s17, 4  ;;  %s29_s18 = int_to_ptr.vmem [resolvable:$true] %s28_s18 }
   0x7   :  { %31 = dma.hbm_to_vmem [thread:$0]  %s27_s16, 32, %s29_s18, [#allocation6]  }
   0x8   :  { %145 = dma.done.wait [#allocation3], 64  }
   0x9   :  { %146 = vsyncadd [#allocation3], 4294967232 }
   0xa   :  { %147 = dma.done.wait [#allocation6], 32  }
   0xb   :  { %148 = vsyncadd [#allocation6], 4294967264  ;;  %v40_v0 = vld [vmem:[#allocation2] sm:$0xf]  ;;  %v41_v1 = vld [vmem:[#allocation5] sm:$0x3] }
   0xc   :  { %v44_v2 = vperm.slane %v41_v1, 0  ;;  %v45_v3 = vperm.slane %v41_v1, 1  ;;  %v42_v4 = vmul.f32 5.656854, %v40_v0  ;;  %vm47_vm0 = vcmask 1041408   ;;  %s153_s0 = smov [#allocation7]  }
   0xd   :  { %s57_s19 = sshll.u32 %s153_s0, 4  ;;  %s59_s21 = sshll.u32 %s180_s2, 4  ;;  %s58_s19 = int_to_ptr.vmem [resolvable:$true] %s57_s19  ;;  %s60_s21 = int_to_ptr.hbm [resolvable:$true] %s59_s21 }
   0xe   :  { %v46_v5 = vrot.slane %v45_v3, 6 }
  0x10   :  { %v48_v6 = vsel %vm47_vm0, %v44_v2, %v46_v5 }
  0x11   :  { %v50_v7 = vadd.f32 %v48_v6, %v42_v4 }
  0x13   :  { %51 = vst [vmem:[#allocation7] sm:$0xf] %v50_v7 }
  0x14   :  { %62 = dma.vmem_to_hbm [thread:$0]  %s58_s19, 64, %s60_s21, [#allocation4]  }
  0x15   :  { %149 = dma.done.wait [#allocation4], 64  }
  0x16   :  { %150 = vsyncadd [#allocation4], 4294967232 }
  0x17   :  { %67 = vsyncpa [#allocation3], 1 }
  0x18   :  { %68 = vsyncpa [#allocation6], 1 }
  0x19   :  { %69 = vsyncpa [#allocation4], 1 }

</bundles_post_ra>
